<compile_context>
chip_gen: v6e
topology: v6e:2x2x1
jax: 0.10.0
libtpu: 0.0.40
codegen_flags: <defaults>
</compile_context>

<pallas_src>
import jax
import jax.numpy as jnp
from jax.experimental import pallas as pl
from jax.experimental.pallas import tpu as pltpu


def _make_conv_kernel(K, dilation, TL, TLW, n_lt):
    def kernel(x_ref, w_ref, b_ref, o_ref):
        # x_ref: (1, Cin_p, Lp)    full padded row of current batch (resident across j)
        # w_ref: (Cout, K*Cin_p)   weight-normalized taps (compute dtype, e.g. bf16)
        # b_ref: (Cout, 1)         f32
        # o_ref: (1, Cout, TL)
        if n_lt == 1:
            base = 0
        else:
            # TL is a multiple of 128 whenever n_lt > 1 (see wrapper) -> aligned start.
            base = pl.multiple_of(pl.program_id(1) * TL, 128)

        # One aligned, lane-dense load of this tile's input window (with halo).
        window = x_ref[0, :, pl.ds(base, TLW)]                      # (Cin_p, TLW)

        # Stack the K tap shifts along the contraction (sublane) axis -> (K*Cin_p, TL).
        # K is tiny and static; slices are static lane shifts of the aligned window.
        stacked = jnp.concatenate(
            [window[:, k * dilation:k * dilation + TL] for k in range(K)], axis=0)

        # Single deep matmul on the MXU, f32 accumulation, bias folded into the result.
        out = jnp.dot(w_ref[...], stacked, preferred_element_type=jnp.float32)
        o_ref[0] = (out + b_ref[...]).astype(o_ref.dtype)

    return kernel


def conv1d_weightnorm(x, weight_v, weight_g, bias, *, dilation=1,
                      compute_dtype=jnp.bfloat16):
    """Forward pass of the PyTorch `Conv` module (weight-normed Conv1d, 'same' pad).

    x:        (B, C_in, L)              NCL, like nn.Conv1d
    weight_v: (C_out, C_in, K)          weight_norm 'v'
    weight_g: (C_out, 1, 1) or (C_out,) weight_norm 'g'
    bias:     (C_out,)
    returns   (B, C_out, L)  in x.dtype
    """
    B, Cin, L = x.shape
    Cout, Cin_w, K = weight_v.shape
    assert Cin_w == Cin
    # TODO(synk): even kernel_size (odd dilation*(K-1)) shortens L in PyTorch; not handled.
    assert (dilation * (K - 1)) % 2 == 0
    pad = dilation * (K - 1) // 2
    halo = dilation * (K - 1)

    # weight_norm (dim=0): w = g * v / ||v||, norm over (C_in, K) per out channel (f32).
    v32 = weight_v.astype(jnp.float32)
    norm = jnp.sqrt(jnp.sum(v32 * v32, axis=(1, 2), keepdims=True))
    w_eff = weight_g.reshape(Cout, 1, 1).astype(jnp.float32) * v32 / norm   # (Cout, Cin, K)

    # Pad Cin to the sublane tile of the compute dtype so the in-kernel sublane
    # concatenation is tile-aligned (no relayout).  No-op for Cin % 16 == 0.
    sub = 16 if jnp.dtype(compute_dtype) == jnp.dtype(jnp.bfloat16) else 8
    Cin_p = -(-Cin // sub) * sub
    if Cin_p != Cin:
        w_eff = jnp.pad(w_eff, ((0, 0), (0, Cin_p - Cin), (0, 0)))
    # (Cout, Cin_p, K) -> (Cout, K, Cin_p) -> (Cout, K*Cin_p); matches in-kernel stacking.
    w2 = jnp.transpose(w_eff, (0, 2, 1)).reshape(Cout, K * Cin_p).astype(compute_dtype)
    b2 = bias.reshape(Cout, 1).astype(jnp.float32)

    # Lane tile: biggest of {512,384,256,128} that divides L AND keeps the f32
    # (Cout, TL) matmul result comfortably inside the vreg file; else full L.
    acc_budget = 192 * 1024
    cands = [c for c in (512, 384, 256, 128) if L % c == 0]
    if cands:
        fitting = [c for c in cands if Cout * c * 4 <= acc_budget]
        TL = max(fitting) if fitting else min(cands)
    else:
        TL = L   # masked stores; acceptable for odd small L
    n_lt = L // TL

    # Padded row: left halo `pad`, right padding so every tile can load an aligned,
    # lane-dense window of width TLW.  The bf16 down-cast is fused into this pass.
    hpad = (-(-halo // 128) * 128) if halo > 0 else 0
    Lp = -(-(L + hpad) // 128) * 128
    x_pad = jnp.pad(x.astype(compute_dtype),
                    ((0, 0), (0, Cin_p - Cin), (pad, Lp - L - pad)))
    TLW = (TL + hpad) if n_lt > 1 else Lp

    kernel = _make_conv_kernel(K, dilation, TL, TLW, n_lt)

    mm_item = jnp.dtype(compute_dtype).itemsize
    out_item = jnp.dtype(x.dtype).itemsize

    # VMEM budget computed from shapes (double-buffered input row + output tile,
    # weights/bias, in-kernel temporaries), with slack; clamped to sane bounds.
    vmem_needed = (
        2 * Cin_p * Lp * mm_item                     # resident padded row (double-buffered)
        + 2 * Cout * TL * out_item                   # output tile (double-buffered)
        + 2 * (w2.size * mm_item + Cout * 128 * 4)   # weights + lane-padded bias
        + (Cin_p * TLW + K * Cin_p * TL) * mm_item   # window + stacked operand
        + Cout * TL * 4)                             # f32 matmul result
    vmem_limit = int(min(max(2 * vmem_needed, 32 << 20), 112 << 20))

    cost = pl.CostEstimate(
        flops=2 * B * L * Cin * Cout * K,
        transcendentals=0,
        bytes_accessed=int(x_pad.size * mm_item + B * Cout * L * out_item
                           + w2.size * mm_item + b2.size * 4),
    )

    return pl.pallas_call(
        kernel,
        out_shape=jax.ShapeDtypeStruct((B, Cout, L), x.dtype),
        grid=(B, n_lt),
        in_specs=[
            pl.BlockSpec((1, Cin_p, Lp), lambda b, j: (b, 0, 0)),     # resident per batch
            pl.BlockSpec((Cout, K * Cin_p), lambda b, j: (0, 0)),     # resident weights
            pl.BlockSpec((Cout, 1), lambda b, j: (0, 0)),             # resident bias
        ],
        out_specs=pl.BlockSpec((1, Cout, TL), lambda b, j: (b, 0, j)),
        compiler_params=pltpu.CompilerParams(
            dimension_semantics=("parallel", "parallel"),
            vmem_limit_bytes=vmem_limit,
        ),
        cost_estimate=cost,
    )(x_pad, w2, b2)


def _ref_conv(x, weight_v, weight_g, bias, dilation, operand_dtype=jnp.float32):
    """Pure-VPU f32 reference (PyTorch Conv1d cross-correlation + weight_norm).

    operand_dtype lets the reference round the matmul operands the same way the
    kernel does (bf16), so the comparison is exact-math up to summation order.
    """
    Cout, Cin, K = weight_v.shape
    pad = dilation * (K - 1) // 2
    v32 = weight_v.astype(jnp.float32)
    norm = jnp.sqrt(jnp.sum(v32 * v32, axis=(1, 2), keepdims=True))
    w = weight_g.reshape(Cout, 1, 1).astype(jnp.float32) * v32 / norm
    w = w.astype(operand_dtype).astype(jnp.float32)
    xq = x.astype(operand_dtype).astype(jnp.float32)
    xp = jnp.pad(xq, ((0, 0), (0, 0), (pad, pad)))
    B, _, L = x.shape
    acc = jnp.zeros((B, Cout, L), jnp.float32)
    for k in range(K):
        xs = xp[:, :, k * dilation:k * dilation + L]                  # (B, Cin, L)
        acc = acc + jnp.sum(w[None, :, :, k, None] * xs[:, None, :, :], axis=2)
    return acc + bias[None, :, None].astype(jnp.float32)


if __name__ == "__main__":
    key = jax.random.PRNGKey(0)
    kx1, kv1, kb1, kx2, kv2, kb2 = jax.random.split(key, 6)

    # ---- Test 1: module defaults (kernel_size=3, dilation=1), small shapes.
    B, C_IN, C_OUT, L, K, DIL = 2, 4, 8, 16, 3, 1
    x = jax.random.normal(kx1, (B, C_IN, L), jnp.float32)
    weight_v = jax.random.normal(kv1, (C_OUT, C_IN, K), jnp.float32)
    # weight_norm init: g = ||v|| per out channel (effective weight == v at init).
    weight_g = jnp.sqrt(jnp.sum(weight_v ** 2, axis=(1, 2), keepdims=True))
    bias = 0.1 * jax.random.normal(kb1, (C_OUT,), jnp.float32)

    out = jax.block_until_ready(
        conv1d_weightnorm(x, weight_v, weight_g, bias, dilation=DIL))
    ref_q = _ref_conv(x, weight_v, weight_g, bias, DIL, operand_dtype=jnp.bfloat16)
    ref_f = _ref_conv(x, weight_v, weight_g, bias, DIL)
    assert out.shape == (B, C_OUT, L) and out.dtype == x.dtype
    # Exact-math check vs. a reference using the same bf16-rounded operands.
    assert jnp.allclose(out, ref_q, atol=1e-2, rtol=1e-2), \
        float(jnp.max(jnp.abs(out - ref_q)))
    # Scale-aware sanity check vs. the full-f32 reference (bf16-operand rounding error).
    assert float(jnp.max(jnp.abs(out - ref_f))) <= 2e-2 * float(jnp.max(jnp.abs(ref_f)))

    # ---- Test 2: tiled-L path (TL=512, 2 lane tiles), dilation=2, deeper channels.
    B2, C_IN2, C_OUT2, L2, DIL2 = 2, 16, 32, 1024, 2
    x2 = jax.random.normal(kx2, (B2, C_IN2, L2), jnp.float32)
    weight_v2 = jax.random.normal(kv2, (C_OUT2, C_IN2, K), jnp.float32)
    weight_g2 = jnp.sqrt(jnp.sum(weight_v2 ** 2, axis=(1, 2), keepdims=True))
    bias2 = 0.1 * jax.random.normal(kb2, (C_OUT2,), jnp.float32)

    out2 = jax.block_until_ready(
        conv1d_weightnorm(x2, weight_v2, weight_g2, bias2, dilation=DIL2))
    ref2_q = _ref_conv(x2, weight_v2, weight_g2, bias2, DIL2, operand_dtype=jnp.bfloat16)
    ref2_f = _ref_conv(x2, weight_v2, weight_g2, bias2, DIL2)
    assert out2.shape == (B2, C_OUT2, L2) and out2.dtype == x2.dtype
    assert jnp.allclose(out2, ref2_q, atol=1e-2, rtol=1e-2), \
        float(jnp.max(jnp.abs(out2 - ref2_q)))
    assert float(jnp.max(jnp.abs(out2 - ref2_f))) <= 2e-2 * float(jnp.max(jnp.abs(ref2_f)))

    print("KERNEL_OK")
</pallas_src>

<mosaic_0001>
module attributes {stable_mosaic.version = 11 : i64} {
  func.func @kernel(%arg0: i32, %arg1: i32, %arg2: memref<1x16x256xbf16, #tpu.memory_space<vmem>>, %arg3: memref<8x48xbf16, #tpu.memory_space<vmem>>, %arg4: memref<8x1xf32, #tpu.memory_space<vmem>>, %arg5: memref<1x8x16xf32, #tpu.memory_space<vmem>>) attributes {dimension_semantics = [#tpu.dimension_semantics<parallel>, #tpu.dimension_semantics<parallel>], iteration_bounds = array<i64: 2, 1>, scalar_prefetch = 0 : i64, scratch_operands = 0 : i64, tpu.core_type = #tpu.core_type<tc>, window_params = [{transform_indices = @transform_0, window_bounds = array<i64: 1, 16, 256>}, {pipeline_mode = #tpu.pipeline_mode<synchronous>, transform_indices = @transform_1, window_bounds = array<i64: 8, 48>}, {pipeline_mode = #tpu.pipeline_mode<synchronous>, transform_indices = @transform_2, window_bounds = array<i64: 8, 1>}, {transform_indices = @transform_3, window_bounds = array<i64: 1, 8, 16>}]} {
    %c0 = arith.constant 0 : index
    %c0_0 = arith.constant 0 : index
    %c0_1 = arith.constant 0 : index
    %0 = vector.load %arg2[%c0, %c0_0, %c0_1] : memref<1x16x256xbf16, #tpu.memory_space<vmem>>, vector<1x16x256xbf16>
    %1 = vector.shape_cast %0 : vector<1x16x256xbf16> to vector<16x256xbf16>
    %2 = vector.extract_strided_slice %1 {offsets = [0, 0], sizes = [16, 16], strides = [1, 1]} : vector<16x256xbf16> to vector<16x16xbf16>
    %3 = vector.extract_strided_slice %1 {offsets = [0, 1], sizes = [16, 16], strides = [1, 1]} : vector<16x256xbf16> to vector<16x16xbf16>
    %4 = vector.extract_strided_slice %1 {offsets = [0, 2], sizes = [16, 16], strides = [1, 1]} : vector<16x256xbf16> to vector<16x16xbf16>
    %5 = tpu.concatenate %2, %3, %4 in 0 : vector<16x16xbf16>, vector<16x16xbf16>, vector<16x16xbf16> -> vector<48x16xbf16>
    %c0_2 = arith.constant 0 : index
    %c0_3 = arith.constant 0 : index
    %6 = vector.load %arg3[%c0_2, %c0_3] : memref<8x48xbf16, #tpu.memory_space<vmem>>, vector<8x48xbf16>
    %cst = arith.constant dense<0.000000e+00> : vector<8x16xf32>
    %7 = tpu.matmul %6, %5, %cst {dimension_numbers = #tpu.dot_dimension_numbers<[1], [0], [0], [1], [0, 0, 1, 1], [], []>} : vector<8x48xbf16>, vector<48x16xbf16>, vector<8x16xf32> -> vector<8x16xf32>
    %c0_4 = arith.constant 0 : index
    %c0_5 = arith.constant 0 : index
    %8 = vector.load %arg4[%c0_4, %c0_5] : memref<8x1xf32, #tpu.memory_space<vmem>>, vector<8x1xf32>
    %9 = vector.broadcast %8 : vector<8x1xf32> to vector<8x16xf32>
    %10 = arith.addf %7, %9 : vector<8x16xf32>
    %c0_6 = arith.constant 0 : index
    %c0_7 = arith.constant 0 : index
    %c0_8 = arith.constant 0 : index
    %11 = vector.load %arg5[%c0_6, %c0_7, %c0_8] : memref<1x8x16xf32, #tpu.memory_space<vmem>>, vector<1x8x16xf32>
    %12 = vector.shape_cast %11 : vector<1x8x16xf32> to vector<8x16xf32>
    %13 = vector.shape_cast %10 : vector<8x16xf32> to vector<1x8x16xf32>
    tpu.vector_store %arg5[%c0_6, %c0_7, %c0_8], %13 {strides = array<i32>} : memref<1x8x16xf32, #tpu.memory_space<vmem>>, vector<1x8x16xf32>,
    return
  }
  func.func @transform_0(%arg0: i32, %arg1: i32) -> (i32, i32, i32) {
    %c0_i32 = arith.constant 0 : i32
    %c0_i32_0 = arith.constant 0 : i32
    %c0_i32_1 = arith.constant 0 : i32
    return %arg0, %c0_i32, %c0_i32_0 : i32, i32, i32
  }
  func.func @transform_1(%arg0: i32, %arg1: i32) -> (i32, i32) {
    %c0_i32 = arith.constant 0 : i32
    %c0_i32_0 = arith.constant 0 : i32
    %c0_i32_1 = arith.constant 0 : i32
    return %c0_i32, %c0_i32_0 : i32, i32
  }
  func.func @transform_2(%arg0: i32, %arg1: i32) -> (i32, i32) {
    %c0_i32 = arith.constant 0 : i32
    %c0_i32_0 = arith.constant 0 : i32
    %c0_i32_1 = arith.constant 0 : i32
    return %c0_i32, %c0_i32_0 : i32, i32
  }
  func.func @transform_3(%arg0: i32, %arg1: i32) -> (i32, i32, i32) {
    %c0_i32 = arith.constant 0 : i32
    %c0_i32_0 = arith.constant 0 : i32
    return %arg0, %c0_i32, %arg1 : i32, i32, i32
  }
}

</mosaic_0001>

<bundles_post_ra>
// kernel: tpu_custom_call.1
= control target key start
LH: loop header
LB: loop body
LE: loop exit
PB: predicated region body
PF: predicated region fallthrough
CT: control target
= control target key end

     0   :  { %8 = vsyncpa [#allocation3], 0  ;;  %s758_s0 = inlined_call_operand.hbm [shape: bf16[2,16,256], index: 0, kind: input, shape index: {}]   ;;  %s759_s1 = inlined_call_operand.vmem [shape: bf16[8,48], index: 1, kind: input, shape index: {}]   ;;  %s760_s2 = inlined_call_operand.vmem [shape: f32[8,1], index: 2, kind: input, shape index: {}]   ;;  %s761_s3 = inlined_call_operand.hbm [shape: f32[2,8,16], index: 3, kind: output, shape index: {}]  }
   0x1   :  { %10 = vsyncpa [#allocation3 + $0x1], 0 }
   0x2   :  { %11 = vsyncpa [#allocation4], 0 }
   0x3   :  { %13 = vsyncpa [#allocation4 + $0x1], 0  ;;  %s607_s12 = smov 0   ;;  %s609_s13 = smov 0  }
   0x4   :  { %s611_s14 = smov 0   ;;  %s613_s15 = smov 0  }
   0x5   :  { %s615_s16 = smov 0   ;;  %s617_s17 = smov 0  }
   0x6 LB: > { %s365_s18 = sadd.s32 4294967295, %s576_s17   ;;  %s366_s19 = sadd.s32 4294967294, %s576_s17   ;;  %s576_s17 = sphi %s617_s17, %s19_s17   ;;  %s572_s16 = sphi %s615_s16, %s772_s16   ;;  %s568_s15 = sphi %s613_s15, %s771_s15   ;;  %s564_s14 = sphi %s611_s14, %s770_s14   ;;  %s560_s13 = sphi %s609_s13, %s769_s13   ;;  %s556_s12 = sphi %s607_s12, %s768_s12  }
   0x7   : > { %s31_s20 = sadd.s32 1, %s572_s16  ;;  %s38_s21 = sadd.s32 1, %s564_s14 }
   0x8   : > { %p33_p0 = scmp.ge.s32.totalorder %s31_s20, 2  ;;  %p45_p1 = scmp.ne.s32.totalorder %s564_s14, %s560_s13 }
   0x9   : > { %p46_p2 = scmp.eq.s32.totalorder %s576_s17, 0  ;;  %p51_p3 = scmp.ne.s32.totalorder %s560_s13, %s556_s12 }
   0xa   : > { %s774_s20 = smov (%p33_p0, %s31_s20), 0  ;;  %p52_p5 = scmp.eq.s32.totalorder %s365_s18, 0 }
   0xb   : > { %p648_p4 = por %p46_p2, %p45_p1  ;;  %s35_s23 = ssub.s32 %s572_s16, %s774_s20 }
   0xc   : > { %p119_p6 = scmp.eq.s32.totalorder %s365_s18, 1  ;;  %p36_p7 = scmp.eq.s32.totalorder %s35_s23, 0 }
   0xd   : > { %p654_p8 = por %p52_p5, %p51_p3  ;;  %p125_p10 = scmp.eq.s32.totalorder %s366_s19, 1 }
   0xe   : > { %p658_p9 = por %p119_p6, %p45_p1  ;;  %p408_p13 = scmp.lt.s32.totalorder %s576_s17, 2 }
   0xf   : > { %s663_s26 = scalar_select %p36_p7, %s564_s14, %s38_s21  }
  0x10   : > { %p665_p11 = por %p125_p10, %p51_p3  ;;  %s151_s28 = sand.u32 1, %s564_s14  }
  0x11   : > { %s369_s29 = sshll.u32 %s151_s28, 4  ;;  %s381_s30 = sshll.u32 %s572_s16, 8 }
  0x12   : > { %s161_s6 = scalar_lea.hbm %s758_s0, %s381_s30  ;;  %s155_s7 = scalar_lea.vmem [#allocation2], %s369_s29 }
  0x13   : > { %s162_s8 = sshll.u32 %s155_s7, 4  ;;  %p678_p0 = pnand %p408_p13, %p648_p4  ;;  %s163_s8 = int_to_ptr.vmem [resolvable:$true] %s162_s8 }
  0x14   : > { %p372_p1 = scmp.ge.s32.totalorder %s576_s17, 1  ;;  %s152_s10 = scalar_lea.sflag [#allocation3], %s151_s28 }
  0x15   : > { %p470_p2 = pneg %p678_p0  ;;  %s481_s11 = scalar_lea.vmem %s163_s8, 256 }
  0x16   : > { %p482_p3 = scmp.ne.s32.totalorder %s163_s8, %s481_s11  ;;  %s578_s18 = smov [#allocation2]  }
  0x17   : > { %s486_s19 = sshll.u32 %s578_s18, 4  ;;  %s487_s19 = int_to_ptr.vmem [resolvable:$false] %s486_s19 }
  0x18   : > { %p484_p5 = pnand %p482_p3, %p470_p2  ;;  %s488_s21 = scalar_lea.vmem %s487_s19, 512 }
  0x19   : > { %p489_p7 = scmp.lt.s32.totalorder %s163_s8, %s487_s19  ;;  %p490_p10 = scmp.lt.s32.totalorder %s488_s21, %s481_s11 }
  0x1a   : > { %p485_p6 = pneg %p484_p5 }
  0x1b   : > { %p491_p12 = por %p490_p10, %p489_p7 }
  0x1d   : > { %p492_p4 = pnand %p491_p12, %p485_p6 }
  0x1f   : > { %495 = shalt.err (!%p492_p4)
}
  0x20   : > { %s579_s22 = smov 128   ;;  %s580_s23 = smov 8  }
  0x21   : > { %403 = dma.hbm_to_vmem [thread:$0]  (!%p678_p0), %s161_s6, 256, %s163_s8, %s152_s10, %s579_s22, %s579_s22, %s580_s23  }
  0x22   : > { %p170_p13 = scmp.lt.s32.totalorder %s576_s17, 3 }
  0x24   : > { %p171_p2 = pnand %p372_p1, %p170_p13 }
  0x25   : > { %s691_s28 = sand.u32 (!%p171_p2), 1, %s560_s13  }
  0x26   : > { %174 = sbr.rel (%p171_p2) target bundleno = 382 (0x17e), region = 32  ;;  %s373_s29 = sshll.u32 (!%p171_p2), %s691_s28, 4 }
  0x27   : > { %s177_s30 = scalar_lea.sflag (!%p171_p2), [#allocation3], %s691_s28  ;;  %s180_s4 = scalar_lea.vmem (!%p171_p2), [#allocation2], %s373_s29 }
  0x2b   : > { %547 = dma.done.wait (%p654_p8), %s177_s30, 256  }
  0x2c   : > { %549 = vsyncadd (%p654_p8), %s177_s30, 4294967040  ;;  %v581_v0 = vmov 0.0   ;;  %vm582_vm0 = vmmov 0   ;;  %v467_v1 = vld [vmem:[%s180_s4] ss:$8 sps:$4 sm:$0xff]   ;;  %v583_v2 = vmov 0  }
  0x2d   : > { %386 = vmatprep.subr.bf16.mxu0 %v581_v0  ;;  %392 = vmatprep.mubr.msk.bf16.mxu0 %vm582_vm0, %v581_v0  ;;  %v219_v3 = vld [vmem:[%s760_s2] sm:$0xff]  ;;  %s584_s7 = smov 126   ;;  %s585_s8 = smov 127   ;;  %vm225_vm1 = vcmask 392192   ;;  %vm269_vm2 = vcmask 130048  }
  0x2e   : > { %465 = vset.pattern.permute.xlu1 %v583_v2  ;;  %466 = vset.pattern.permute.xlu0 %v583_v2  ;;  %v218_v6 = vld [vmem:[%s759_s1] sm:$0xf]  ;;  %s374_s10 = sshll.u32 %s691_s28, 3  ;;  %s378_s11 = sshll.u32 %s568_s15, 7 }
  0x2f   : > { %215 = vrot.lane.b32.xlu0 %v467_v1, %s584_s7  ;;  %222 = vperm.xlu1 %465, %v219_v3   ;;  %s202_s18 = scalar_lea.vmem [#allocation5], %s374_s10  ;;  %s710_s23 = scalar_lea.hbm %s761_s3, %s378_s11 }
  0x30   : > { %s286_s19 = sshll.u32 %s202_s18, 4  ;;  %s272_s29 = scalar_lea.sflag [#allocation4], %s691_s28  ;;  %s712_s19 = int_to_ptr.vmem [resolvable:$true] %s286_s19 }
  0x31   : > { %s496_s15 = scalar_lea.vmem %s712_s19, 128  ;;  %s586_s30 = smov [#allocation5]  }
  0x32   : > { %p497_p8 = scmp.ne.s32.totalorder %s712_s19, %s496_s15  ;;  %s500_s4 = sshll.u32 %s586_s30, 4  ;;  %s501_s4 = int_to_ptr.vmem [resolvable:$false] %s500_s4 }
  0x33   : > { %212 = vrot.lane.b32.xlu0 %v467_v1, %s585_s8  ;;  %s502_s5 = scalar_lea.vmem %s501_s4, 256  ;;  %p503_p1 = scmp.lt.s32.totalorder %s712_s19, %s501_s4 }
  0x34   : > { %p498_p12 = pnand %p497_p8, %p658_p9  ;;  %p504_p3 = scmp.lt.s32.totalorder %s502_s5, %s496_s15 }
  0x36   : > { %p499_p0 = pneg %p498_p12  ;;  %p505_p5 = por %p504_p3, %p503_p1 }
  0x38   : > { %p506_p6 = pnand %p505_p5, %p499_p0 }
  0xa1   : > { %v216_v4 = vpop.permute.xlu0 %215 }
  0xa2   : > { %387 = vmatpush3.bf16.msra.mxu0 %v216_v4 }
  0xa3   : > { %388 = vmatprep.subr.bf16.mxu0 %v581_v0 }
  0xa5   : > { %v213_v5 = vpop.permute.xlu0 %212 }
  0xa6   : > { %389 = vmatpush3.bf16.msra.mxu0 %v213_v5 }
  0xa7   : > { %390 = vmatprep.subr.bf16.mxu0 %v581_v0 }
  0xaa   : > { %391 = vmatpush3.bf16.msra.mxu0 %v467_v1  ;;  %v223_v7 = vpop.permute.xlu1 %222 }
  0xad   : > { %393 = vmatmul.mubr.msk.bf16.vlgmr.msra.gmra.mxu0 %vm225_vm1, %v218_v6 }
 0x16d   : > { %v263_v8 = vpop.f32.mrf.mxu0 }
 0x16e   : > { %v264_v9 = vadd.f32 %v263_v8, %v223_v7 }
 0x16f   : > { %v394_v10 = vpop.f32.mrf.mxu0 }
 0x170   : > { %270 = vst.msk [vmem:[%s202_s18] sm:$0xff] %vm269_vm2, %v264_v9 }
 0x171   : > { %v266_v11 = vpop.f32.mrf.mxu0 }
 0x172   : > { %509 = shalt.err (!%p506_p6)
}
 0x173   : > { %s510_s6 = scalar_lea.hbm %s710_s23, 128  ;;  %s514_s8 = scalar_lea.hbm %s761_s3, 256 }
 0x174   : > { %p511_p7 = scmp.ne.s32.totalorder %s710_s23, %s510_s6  ;;  %p515_p13 = scmp.lt.s32.totalorder %s710_s23, %s761_s3 }
 0x175   : > { %p516_p2 = scmp.lt.s32.totalorder %s514_s8, %s510_s6 }
 0x176   : > { %p512_p10 = pnand %p511_p7, %p658_p9 }
 0x177   : > { %p517_p8 = por %p516_p2, %p515_p13 }
 0x178   : > { %p513_p4 = pneg %p512_p10 }
 0x17a   : > { %p518_p12 = pnand %p517_p8, %p513_p4 }
 0x17c   : > { %521 = shalt.err (!%p518_p12)
}
 0x17d   : > { %398 = dma.vmem_to_hbm [thread:$0]  (%p658_p9), %s712_s19, 128, %s710_s23, %s272_s29   ;;  %v395_v12 = vpop.f32.mrf.mxu0 }
 0x17e PF: > { %s298_s10 = sand.u32 1, %s556_s12   ;;  %p767_p0 = scmp.ge.s32.totalorder %s576_s17, 2 }
 0x17f   : > { %s299_s11 = scalar_lea.sflag [#allocation4], %s298_s10 }
 0x180   : > { %p405_p1 = pnand %p767_p0, %p665_p11 }
 0x182   : > { %p406_p3 = pneg %p405_p1 }
 0x184   : > { %551 = dma.done.wait (%p406_p3), %s299_s11, 128  }
 0x185   : > { %553 = vsyncadd (%p406_p3), %s299_s11, 4294967168  ;;  %s19_s17 = sadd.s32 1, %s576_s17   ;;  %s768_s12 = smov %s560_s13 }
 0x186   : > { %p16_p5 = scmp.ge.s32.totalorder %s19_s17, 4   ;;  %s769_s13 = smov %s564_s14 }
 0x187   : > { %s770_s14 = smov %s663_s26  ;;  %s771_s15 = smov %s572_s16 }
 0x188   : > { %s772_s16 = smov %s774_s20  ;;  %18 = sbr.rel (!%p16_p5) target bundleno = 6 (0x6), region = 77 }
 0x18d   :  { %304 = vsyncpa [#allocation3], 1 }
 0x18e   :  { %306 = vsyncpa [#allocation3 + $0x1], 1 }
 0x18f   :  { %307 = vsyncpa [#allocation4], 1 }
 0x190   :  { %309 = vsyncpa [#allocation4 + $0x1], 1 }

</bundles_post_ra>
